<compile_context>
chip_gen: v7x
topology: tpu7x:2x2x1
jax: 0.10.0
libtpu: 0.0.40
codegen_flags: <defaults>
</compile_context>

<pallas_src>
import functools

import jax
import jax.numpy as jnp
from jax import lax
from jax.experimental import pallas as pl
from jax.experimental.pallas import tpu as pltpu

# distGCN (d2d) is an identity stub; the lane-packed W_se_d feeds d_node1
# into BOTH SE halves, which is only valid under this assumption.
_D2D_IS_IDENTITY = True


# ----------------------------------------------------------------------------
# Fused forward kernel: grid over N_d tiles, batch-level work at step 0,
# [B, 1] output block used as the reduction accumulator.
# ----------------------------------------------------------------------------
def _fused_network_kernel(
    # node / structure data
    r_node_ref, solv_ref, a_i2d_ref, seg_r_ref, seg_dT_ref, seg_s_ref,
    # packed weights
    w_ri_ref, w_semb_ref,
    w_ref1_ref, b_ref1_ref, w_ref2_ref, b_ref2_ref, w_ref3_ref, b_ref3_ref,
    w_se_d_ref, w_pool_h_ref, w_pool_s_ref, b_se_ref,
    w_head_ref, b_head_ref,
    # output
    out_ref,
    # VMEM scratch (persists across grid steps)
    i_node_scr, pooled_scr,
    *, H):
  f32 = jnp.float32
  bf16 = jnp.bfloat16
  step = pl.program_id(0)

  # ---------------- batch-level work, once, at grid step 0 -----------------
  @pl.when(step == 0)
  def _init():
    # embeddings (bias-free Linears; r- and i-node embeddings fused lane-wise)
    ri = jnp.dot(r_node_ref[...], w_ri_ref[...], preferred_element_type=f32)  # [N_r, 2H]
    r_node2 = ri[:, :H].astype(bf16)
    i_node_scr[...] = ri[:, H:].astype(bf16)                                   # kept for i2d
    solv_nodes = jnp.dot(solv_ref[...], w_semb_ref[...],
                         preferred_element_type=f32).astype(bf16)              # [N_s, S]

    # TODO(synk): MPNN (r2r), GAT (i2i) and GATs (solvent) stacks are
    #             identity stubs; SumPooling == Seg @ feats.
    h = jnp.dot(seg_r_ref[...], r_node2, preferred_element_type=f32)           # [B, H]
    solv_h = jnp.dot(seg_s_ref[...], solv_nodes, preferred_element_type=f32)   # [B, S]
    h_b, solv_b = h.astype(bf16), solv_h.astype(bf16)

    # referLayer (Dropout = eval identity), LeakyReLU slope 0.01
    t = jnp.dot(h_b, w_ref1_ref[...], preferred_element_type=f32) + b_ref1_ref[...]
    t = jnp.where(t > 0, t, 0.01 * t)
    t = jnp.dot(t.astype(bf16), w_ref2_ref[...], preferred_element_type=f32) + b_ref2_ref[...]
    t = jnp.where(t > 0, t, 0.01 * t)
    refer_p = (jnp.dot(t.astype(bf16), w_ref3_ref[...], preferred_element_type=f32)
               + b_ref3_ref[...])                                              # [B, 1]

    # SE first-layer contributions of the pooled (per-graph) tensors,
    # projected ONCE at batch level (exact: the layer is linear).  Expanded
    # per d-node in the tiled loop below via the Seg_d^T contraction
    # (== repeat_interleave followed by the Linear).  Bias folded in here.
    pooled = (jnp.dot(solv_b, w_pool_s_ref[...], preferred_element_type=f32)
              + jnp.dot(h_b, w_pool_h_ref[...], preferred_element_type=f32)
              + b_se_ref[...])                                                 # [B, 2*h2]
    pooled_scr[...] = pooled.astype(bf16)

    # Output block is revisited at every grid step: seed with refer_p and
    # accumulate the per-tile SumPooling partials into it below.
    out_ref[...] = refer_p

  # ---------------- per-N_d-tile work (every grid step) --------------------
  # i2d: copy_u('h') + sum  ==  A_i2d @ i_node   (d2d is an identity stub)
  d1 = jnp.dot(a_i2d_ref[...], i_node_scr[...], preferred_element_type=f32)    # [T, H]
  # expansion of pooled SE pre-activations to the d-nodes of this tile
  exp_t = jnp.dot(seg_dT_ref[...], pooled_scr[...], preferred_element_type=f32)  # [T, 2*h2]
  pre = jnp.dot(d1.astype(jnp.bfloat16), w_se_d_ref[...],
                preferred_element_type=f32) + exp_t                            # [T, 2*h2]
  t_se = jnp.maximum(pre, 0.0)                                                 # ReLU (BN eval = id)

  # packed width-1 heads (block-diagonal): [tanh head | sigmoid head]
  heads = (jnp.dot(t_se.astype(jnp.bfloat16), w_head_ref[...],
                   preferred_element_type=f32) + b_head_ref[...])              # [T, 2]
  se = jnp.tanh(heads[:, 0:1]) * (2.0 * jax.nn.sigmoid(heads[:, 1:2]))         # [T, 1]

  # SumPooling over this tile's d-nodes: Seg_d @ se, expressed as a
  # dot_general contracting dim 0 of Seg_d^T (no transpose materialized).
  partial = lax.dot_general(seg_dT_ref[...].astype(f32), se,
                            dimension_numbers=(((0,), (0,)), ((), ())),
                            preferred_element_type=f32)                        # [B, 1]
  out_ref[...] += partial


# ----------------------------------------------------------------------------
# Wrapper: padding, bf16 casts, BlockSpecs, cost estimate
# ----------------------------------------------------------------------------
def network_forward(packed, r_node, solv_node_feats, A_i2d, Seg_r, Seg_d, Seg_s,
                    *, hidden_dim, solvent_dim, tile_nd=16):
  f32, bf16 = jnp.float32, jnp.bfloat16
  B, N_r = Seg_r.shape
  N_d = A_i2d.shape[0]
  N_s = Seg_s.shape[1]
  node_dim = r_node.shape[1]
  H, S = hidden_dim, solvent_dim
  h2, h4 = H // 2, H // 4

  # pad the d-node axis to a multiple of the tile (zero rows / zero segment
  # columns contribute nothing to the pooled sum).
  n_d_pad = -(-N_d // tile_nd) * tile_nd
  pad = n_d_pad - N_d
  a_i2d_p = jnp.pad(A_i2d, ((0, pad), (0, 0))).astype(bf16)      # [N_d_pad, N_r]
  seg_dT_p = jnp.pad(Seg_d.T, ((0, pad), (0, 0))).astype(bf16)   # [N_d_pad, B]
  num_tiles = n_d_pad // tile_nd

  inputs = (
      r_node.astype(bf16),
      solv_node_feats.astype(bf16),
      a_i2d_p,
      Seg_r.astype(bf16),
      seg_dT_p,
      Seg_s.astype(bf16),
      packed["W_ri"], packed["W_semb"],
      packed["W_ref1"], packed["b_ref1"],
      packed["W_ref2"], packed["b_ref2"],
      packed["W_ref3"], packed["b_ref3"],
      packed["W_se_d"], packed["W_pool_h"], packed["W_pool_s"], packed["b_se"],
      packed["W_head"], packed["b_head"],
  )

  in_specs = []
  for idx, x in enumerate(inputs):
    if idx == 2:        # A_i2d: tiled along the d-node (row) axis
      in_specs.append(pl.BlockSpec((tile_nd, N_r), lambda i: (i, 0)))
    elif idx == 4:      # Seg_d^T: tiled along the d-node (row) axis
      in_specs.append(pl.BlockSpec((tile_nd, B), lambda i: (i, 0)))
    else:               # full-block, resident across all grid steps
      in_specs.append(pl.BlockSpec(x.shape, lambda i: (0, 0)))

  # advisory cost model so XLA can schedule surrounding work around the call
  mm = [
      (N_r, node_dim, 2 * H), (N_s, node_dim, S),
      (B, N_s, S), (B, N_r, H),
      (B, H, h2), (B, h2, h4), (B, h4, 1),
      (B, S, 2 * h2), (B, H, 2 * h2),
  ]
  per_tile = [
      (tile_nd, N_r, H), (tile_nd, B, 2 * h2),
      (tile_nd, H, 2 * h2), (tile_nd, 2 * h2, 2), (B, tile_nd, 1),
  ]
  flops = 2 * (sum(m * n * k for m, n, k in mm)
               + num_tiles * sum(m * n * k for m, n, k in per_tile))
  bytes_accessed = sum(int(x.size) * x.dtype.itemsize for x in inputs) + B * 4
  cost = pl.CostEstimate(flops=flops, transcendentals=2 * n_d_pad,
                         bytes_accessed=bytes_accessed)

  kernel = functools.partial(_fused_network_kernel, H=H)
  # TODO(synk): the reduction over N_d tiles forces 'arbitrary'; for v7x
  #             megacore, emit per-tile partial outputs on a 'parallel' axis
  #             and reduce outside the kernel.
  return pl.pallas_call(
      kernel,
      out_shape=jax.ShapeDtypeStruct((B, 1), jnp.float32),
      grid=(num_tiles,),
      in_specs=in_specs,
      out_specs=pl.BlockSpec((B, 1), lambda i: (0, 0)),
      scratch_shapes=[pltpu.VMEM((N_r, H), bf16),        # i_node
                      pltpu.VMEM((B, 2 * h2), bf16)],    # pooled SE pre-acts
      compiler_params=pltpu.CompilerParams(
          dimension_semantics=("arbitrary",),
          vmem_limit_bytes=32 * 1024 * 1024),
      cost_estimate=cost,
  )(*inputs)


# ----------------------------------------------------------------------------
# Parameter construction + lane-wise weight packing (done once, outside fwd)
# ----------------------------------------------------------------------------
def init_params(key, node_dim, hidden_dim, solvent_dim):
  ks = jax.random.split(key, 16)
  u = lambda k, shape, s=0.1: jax.random.uniform(k, shape, jnp.float32, -s, s)
  H, S = hidden_dim, solvent_dim
  h2, h4 = H // 2, H // 4
  return {
      # bias-free embeddings
      "W_remb": u(ks[0], (node_dim, H)),
      "W_iemb": u(ks[1], (node_dim, H)),
      "W_semb": u(ks[2], (node_dim, S)),
      # TODO(synk): embedding_edge_lin omitted — its only consumer (the MPNN
      #             r2r stack) is an identity stub (dead work).
      # referLayer
      "W_ref1": u(ks[3], (H, h2)),   "b_ref1": u(ks[4], (h2,)),
      "W_ref2": u(ks[5], (h2, h4)),  "b_ref2": u(ks[6], (h4,)),
      "W_ref3": u(ks[7], (h4, 1)),   "b_ref3": u(ks[8], (1,)),
      # SElayer1: Linear(H+S, h2) -> BN(id) -> ReLU -> Linear(h2, 1) -> Tanh
      "W_se1a": u(ks[9], (H + S, h2)),      "b_se1a": u(ks[10], (h2,)),
      "W_se1b": u(ks[11], (h2, 1)),         "b_se1b": u(ks[12], (1,)),
      # SElayer2_: Linear(2H+S, h2) -> BN(id) -> ReLU -> Linear(h2, 1) -> Sigmoid
      "W_se2a": u(ks[13], (2 * H + S, h2)), "b_se2a": u(ks[14], (h2,)),
      "W_se2b": u(ks[15], (h2, 1)),         "b_se2b": jnp.zeros((1,), jnp.float32),
  }


def pack_params(p, hidden_dim, solvent_dim):
  """Merge shared-input / narrow-head weights into lane-dense bf16 slabs."""
  assert _D2D_IS_IDENTITY, "W_se_d lane-packing requires d2d == identity"
  H, S = hidden_dim, solvent_dim
  h2 = H // 2
  f32, bf16 = jnp.float32, jnp.bfloat16
  zcol = jnp.zeros((h2, 1), f32)
  w = lambda x: x.astype(bf16)
  b = lambda x: x.reshape(1, -1).astype(f32)
  return {
      # r-node and i-node embeddings fused along the lane axis
      "W_ri": w(jnp.concatenate([p["W_remb"], p["W_iemb"]], axis=1)),          # [node, 2H]
      "W_semb": w(p["W_semb"]),                                                # [node, S]
      "W_ref1": w(p["W_ref1"]), "b_ref1": b(p["b_ref1"]),
      "W_ref2": w(p["W_ref2"]), "b_ref2": b(p["b_ref2"]),
      "W_ref3": w(p["W_ref3"]), "b_ref3": b(p["b_ref3"]),
      # d_node block of the SE first Linears, packed [se1 | se2] lane-wise
      "W_se_d": w(jnp.concatenate([p["W_se1a"][:H], p["W_se2a"][:H]], axis=1)),          # [H, 2*h2]
      # pooled-level projections (applied at [B, *] size, expanded afterwards):
      # h feeds only SElayer2_, solv_h feeds both halves
      "W_pool_h": w(jnp.concatenate([jnp.zeros((H, h2), f32),
                                     p["W_se2a"][H:2 * H]], axis=1)),                    # [H, 2*h2]
      "W_pool_s": w(jnp.concatenate([p["W_se1a"][H:H + S],
                                     p["W_se2a"][2 * H:2 * H + S]], axis=1)),            # [S, 2*h2]
      "b_se": b(jnp.concatenate([p["b_se1a"], p["b_se2a"]])),                            # [1, 2*h2]
      # width-1 heads packed block-diagonally -> one [2*h2, 2] matmul
      "W_head": w(jnp.block([[p["W_se1b"], zcol], [zcol, p["W_se2b"]]])),                # [2*h2, 2]
      "b_head": b(jnp.concatenate([p["b_se1b"], p["b_se2b"]])),                          # [1, 2]
  }


# ----------------------------------------------------------------------------
# Pure-JAX f32 reference (mirrors the PyTorch forward with identity stubs)
# ----------------------------------------------------------------------------
def reference_forward(p, r_node, solv, A_i2d, Seg_r, Seg_d, Seg_s, *, H, S):
  r2 = r_node @ p["W_remb"]
  i_n = r_node @ p["W_iemb"]
  sn = solv @ p["W_semb"]
  d1 = A_i2d @ i_n
  solv_h = Seg_s @ sn
  h = Seg_r @ r2
  t = h @ p["W_ref1"] + p["b_ref1"]
  t = jnp.where(t > 0, t, 0.01 * t)
  t = t @ p["W_ref2"] + p["b_ref2"]
  t = jnp.where(t > 0, t, 0.01 * t)
  refer_p = t @ p["W_ref3"] + p["b_ref3"]
  solv_exp = Seg_d.T @ solv_h
  h_exp = Seg_d.T @ h
  v1 = jnp.concatenate([d1, solv_exp], axis=1)
  pre1 = jnp.maximum(v1 @ p["W_se1a"] + p["b_se1a"], 0.0)
  se1 = jnp.tanh(pre1 @ p["W_se1b"] + p["b_se1b"])
  v2 = jnp.concatenate([d1, h_exp, solv_exp], axis=1)
  pre2 = jnp.maximum(v2 @ p["W_se2a"] + p["b_se2a"], 0.0)
  se2 = jax.nn.sigmoid(pre2 @ p["W_se2b"] + p["b_se2b"]) * 2.0
  se = se2 * se1
  return refer_p + Seg_d @ se


# ----------------------------------------------------------------------------
# main
# ----------------------------------------------------------------------------
if __name__ == "__main__":
  node_dim = 8
  hidden_dim, solvent_dim = 32, 32
  B = 2                         # graphs in the batch
  nr_per_graph = [5, 3]         # r_nd counts  -> N_r = 8 (i_nd == r_nd here)
  nd_per_graph = [10, 9]        # d_nd counts  -> N_d = 19 (padded to 32 -> 2 tiles)
  ns_per_graph = [4, 4]         # solvent r_nd -> N_s = 8
  N_r, N_d, N_s = sum(nr_per_graph), sum(nd_per_graph), sum(ns_per_graph)

  key = jax.random.PRNGKey(0)
  k_par, k_r, k_s, k_a = jax.random.split(key, 4)

  params = init_params(k_par, node_dim, hidden_dim, solvent_dim)
  packed = pack_params(params, hidden_dim, solvent_dim)

  r_node = jax.random.normal(k_r, (N_r, node_dim), jnp.float32)
  solv_node_feats = jax.random.normal(k_s, (N_s, node_dim), jnp.float32)

  # deterministic synthetic dense graph structure
  A_i2d = (jax.random.uniform(k_a, (N_d, N_r)) > 0.6).astype(jnp.float32)

  def seg_matrix(counts, total):
    rows = []
    for g, c in enumerate(counts):
      rows += [g] * c
    seg = jnp.zeros((len(counts), total), jnp.float32)
    return seg.at[jnp.array(rows), jnp.arange(total)].set(1.0)

  Seg_r = seg_matrix(nr_per_graph, N_r)   # [B, N_r]
  Seg_d = seg_matrix(nd_per_graph, N_d)   # [B, N_d]
  Seg_s = seg_matrix(ns_per_graph, N_s)   # [B, N_s]

  out = network_forward(packed, r_node, solv_node_feats, A_i2d, Seg_r, Seg_d, Seg_s,
                        hidden_dim=hidden_dim, solvent_dim=solvent_dim, tile_nd=16)
  out = jax.block_until_ready(out)
  assert out.shape == (B, 1)
  assert bool(jnp.all(jnp.isfinite(out)))

  ref = reference_forward(params, r_node, solv_node_feats, A_i2d, Seg_r, Seg_d, Seg_s,
                          H=hidden_dim, S=solvent_dim)
  assert bool(jnp.allclose(out, ref, rtol=5e-2, atol=5e-2)), (
      f"kernel vs reference mismatch:\n{out}\nvs\n{ref}")
  print("KERNEL_OK")
</pallas_src>

<mosaic_0001>
module attributes {stable_mosaic.version = 11 : i64} {
  func.func @_fused_network_kernel(%arg0: i32, %arg1: memref<8x8xbf16, #tpu.memory_space<vmem>>, %arg2: memref<8x8xbf16, #tpu.memory_space<vmem>>, %arg3: memref<16x8xbf16, #tpu.memory_space<vmem>>, %arg4: memref<2x8xbf16, #tpu.memory_space<vmem>>, %arg5: memref<16x2xbf16, #tpu.memory_space<vmem>>, %arg6: memref<2x8xbf16, #tpu.memory_space<vmem>>, %arg7: memref<8x64xbf16, #tpu.memory_space<vmem>>, %arg8: memref<8x32xbf16, #tpu.memory_space<vmem>>, %arg9: memref<32x16xbf16, #tpu.memory_space<vmem>>, %arg10: memref<1x16xf32, #tpu.memory_space<vmem>>, %arg11: memref<16x8xbf16, #tpu.memory_space<vmem>>, %arg12: memref<1x8xf32, #tpu.memory_space<vmem>>, %arg13: memref<8x1xbf16, #tpu.memory_space<vmem>>, %arg14: memref<1x1xf32, #tpu.memory_space<vmem>>, %arg15: memref<32x32xbf16, #tpu.memory_space<vmem>>, %arg16: memref<32x32xbf16, #tpu.memory_space<vmem>>, %arg17: memref<32x32xbf16, #tpu.memory_space<vmem>>, %arg18: memref<1x32xf32, #tpu.memory_space<vmem>>, %arg19: memref<32x2xbf16, #tpu.memory_space<vmem>>, %arg20: memref<1x2xf32, #tpu.memory_space<vmem>>, %arg21: memref<2x1xf32, #tpu.memory_space<vmem>>, %arg22: memref<8x32xbf16, #tpu.memory_space<vmem>>, %arg23: memref<2x32xbf16, #tpu.memory_space<vmem>>) attributes {dimension_semantics = [#tpu.dimension_semantics<arbitrary>], iteration_bounds = array<i64: 2>, scalar_prefetch = 0 : i64, scratch_operands = 2 : i64, tpu.core_type = #tpu.core_type<tc>, window_params = [{pipeline_mode = #tpu.pipeline_mode<synchronous>, transform_indices = @transform_0, window_bounds = array<i64: 8, 8>}, {pipeline_mode = #tpu.pipeline_mode<synchronous>, transform_indices = @transform_1, window_bounds = array<i64: 8, 8>}, {transform_indices = @transform_2, window_bounds = array<i64: 16, 8>}, {pipeline_mode = #tpu.pipeline_mode<synchronous>, transform_indices = @transform_3, window_bounds = array<i64: 2, 8>}, {transform_indices = @transform_4, window_bounds = array<i64: 16, 2>}, {pipeline_mode = #tpu.pipeline_mode<synchronous>, transform_indices = @transform_5, window_bounds = array<i64: 2, 8>}, {pipeline_mode = #tpu.pipeline_mode<synchronous>, transform_indices = @transform_6, window_bounds = array<i64: 8, 64>}, {pipeline_mode = #tpu.pipeline_mode<synchronous>, transform_indices = @transform_7, window_bounds = array<i64: 8, 32>}, {pipeline_mode = #tpu.pipeline_mode<synchronous>, transform_indices = @transform_8, window_bounds = array<i64: 32, 16>}, {pipeline_mode = #tpu.pipeline_mode<synchronous>, transform_indices = @transform_9, window_bounds = array<i64: 1, 16>}, {pipeline_mode = #tpu.pipeline_mode<synchronous>, transform_indices = @transform_10, window_bounds = array<i64: 16, 8>}, {pipeline_mode = #tpu.pipeline_mode<synchronous>, transform_indices = @transform_11, window_bounds = array<i64: 1, 8>}, {pipeline_mode = #tpu.pipeline_mode<synchronous>, transform_indices = @transform_12, window_bounds = array<i64: 8, 1>}, {pipeline_mode = #tpu.pipeline_mode<synchronous>, transform_indices = @transform_13, window_bounds = array<i64: 1, 1>}, {pipeline_mode = #tpu.pipeline_mode<synchronous>, transform_indices = @transform_14, window_bounds = array<i64: 32, 32>}, {pipeline_mode = #tpu.pipeline_mode<synchronous>, transform_indices = @transform_15, window_bounds = array<i64: 32, 32>}, {pipeline_mode = #tpu.pipeline_mode<synchronous>, transform_indices = @transform_16, window_bounds = array<i64: 32, 32>}, {pipeline_mode = #tpu.pipeline_mode<synchronous>, transform_indices = @transform_17, window_bounds = array<i64: 1, 32>}, {pipeline_mode = #tpu.pipeline_mode<synchronous>, transform_indices = @transform_18, window_bounds = array<i64: 32, 2>}, {pipeline_mode = #tpu.pipeline_mode<synchronous>, transform_indices = @transform_19, window_bounds = array<i64: 1, 2>}, {pipeline_mode = #tpu.pipeline_mode<synchronous>, transform_indices = @transform_20, window_bounds = array<i64: 2, 1>}]} {
    %c0_i32 = arith.constant 0 : i32
    %0 = arith.cmpi eq, %arg0, %c0_i32 : i32
    %1 = arith.extui %0 : i1 to i32
    %c0_i32_0 = arith.constant 0 : i32
    %2 = arith.cmpi ne, %1, %c0_i32_0 : i32
    scf.if %2 {
      %c0_27 = arith.constant 0 : index
      %c0_28 = arith.constant 0 : index
      %38 = vector.load %arg1[%c0_27, %c0_28] : memref<8x8xbf16, #tpu.memory_space<vmem>>, vector<8x8xbf16>
      %c0_29 = arith.constant 0 : index
      %c0_30 = arith.constant 0 : index
      %39 = vector.load %arg7[%c0_29, %c0_30] : memref<8x64xbf16, #tpu.memory_space<vmem>>, vector<8x64xbf16>
      %cst_31 = arith.constant dense<0.000000e+00> : vector<8x64xf32>
      %40 = tpu.matmul %38, %39, %cst_31 {dimension_numbers = #tpu.dot_dimension_numbers<[1], [0], [0], [1], [0, 0, 1, 1], [], []>} : vector<8x8xbf16>, vector<8x64xbf16>, vector<8x64xf32> -> vector<8x64xf32>
      %41 = vector.extract_strided_slice %40 {offsets = [0, 0], sizes = [8, 32], strides = [1, 1]} : vector<8x64xf32> to vector<8x32xf32>
      %42 = arith.truncf %41 : vector<8x32xf32> to vector<8x32xbf16>
      %43 = vector.extract_strided_slice %40 {offsets = [0, 32], sizes = [8, 32], strides = [1, 1]} : vector<8x64xf32> to vector<8x32xf32>
      %44 = arith.truncf %43 : vector<8x32xf32> to vector<8x32xbf16>
      %c0_32 = arith.constant 0 : index
      %c0_33 = arith.constant 0 : index
      %45 = vector.load %arg22[%c0_32, %c0_33] : memref<8x32xbf16, #tpu.memory_space<vmem>>, vector<8x32xbf16>
      tpu.vector_store %arg22[%c0_32, %c0_33], %44 {strides = array<i32>} : memref<8x32xbf16, #tpu.memory_space<vmem>>, vector<8x32xbf16>,
      %c0_34 = arith.constant 0 : index
      %c0_35 = arith.constant 0 : index
      %46 = vector.load %arg2[%c0_34, %c0_35] : memref<8x8xbf16, #tpu.memory_space<vmem>>, vector<8x8xbf16>
      %c0_36 = arith.constant 0 : index
      %c0_37 = arith.constant 0 : index
      %47 = vector.load %arg8[%c0_36, %c0_37] : memref<8x32xbf16, #tpu.memory_space<vmem>>, vector<8x32xbf16>
      %cst_38 = arith.constant dense<0.000000e+00> : vector<8x32xf32>
      %48 = tpu.matmul %46, %47, %cst_38 {dimension_numbers = #tpu.dot_dimension_numbers<[1], [0], [0], [1], [0, 0, 1, 1], [], []>} : vector<8x8xbf16>, vector<8x32xbf16>, vector<8x32xf32> -> vector<8x32xf32>
      %49 = arith.truncf %48 : vector<8x32xf32> to vector<8x32xbf16>
      %c0_39 = arith.constant 0 : index
      %c0_40 = arith.constant 0 : index
      %50 = vector.load %arg4[%c0_39, %c0_40] : memref<2x8xbf16, #tpu.memory_space<vmem>>, vector<2x8xbf16>
      %cst_41 = arith.constant dense<0.000000e+00> : vector<2x32xf32>
      %51 = tpu.matmul %50, %42, %cst_41 {dimension_numbers = #tpu.dot_dimension_numbers<[1], [0], [0], [1], [0, 0, 1, 1], [], []>} : vector<2x8xbf16>, vector<8x32xbf16>, vector<2x32xf32> -> vector<2x32xf32>
      %c0_42 = arith.constant 0 : index
      %c0_43 = arith.constant 0 : index
      %52 = vector.load %arg6[%c0_42, %c0_43] : memref<2x8xbf16, #tpu.memory_space<vmem>>, vector<2x8xbf16>
      %cst_44 = arith.constant dense<0.000000e+00> : vector<2x32xf32>
      %53 = tpu.matmul %52, %49, %cst_44 {dimension_numbers = #tpu.dot_dimension_numbers<[1], [0], [0], [1], [0, 0, 1, 1], [], []>} : vector<2x8xbf16>, vector<8x32xbf16>, vector<2x32xf32> -> vector<2x32xf32>
      %54 = arith.truncf %51 : vector<2x32xf32> to vector<2x32xbf16>
      %55 = arith.truncf %53 : vector<2x32xf32> to vector<2x32xbf16>
      %c0_45 = arith.constant 0 : index
      %c0_46 = arith.constant 0 : index
      %56 = vector.load %arg9[%c0_45, %c0_46] : memref<32x16xbf16, #tpu.memory_space<vmem>>, vector<32x16xbf16>
      %cst_47 = arith.constant dense<0.000000e+00> : vector<2x16xf32>
      %57 = tpu.matmul %54, %56, %cst_47 {dimension_numbers = #tpu.dot_dimension_numbers<[1], [0], [0], [1], [0, 0, 1, 1], [], []>} : vector<2x32xbf16>, vector<32x16xbf16>, vector<2x16xf32> -> vector<2x16xf32>
      %c0_48 = arith.constant 0 : index
      %c0_49 = arith.constant 0 : index
      %58 = vector.load %arg10[%c0_48, %c0_49] : memref<1x16xf32, #tpu.memory_space<vmem>>, vector<1x16xf32>
      %59 = vector.broadcast %58 : vector<1x16xf32> to vector<2x16xf32>
      %60 = arith.addf %57, %59 : vector<2x16xf32>
      %cst_50 = arith.constant 0.000000e+00 : f32
      %61 = vector.broadcast %cst_50 : f32 to vector<2x16xf32>
      %62 = arith.cmpf ogt, %60, %61 : vector<2x16xf32>
      %cst_51 = arith.constant 0.00999999977 : f32
      %63 = vector.broadcast %cst_51 : f32 to vector<2x16xf32>
      %64 = arith.mulf %63, %60 : vector<2x16xf32>
      %65 = arith.select %62, %60, %64 : vector<2x16xi1>, vector<2x16xf32>
      %66 = arith.truncf %65 : vector<2x16xf32> to vector<2x16xbf16>
      %c0_52 = arith.constant 0 : index
      %c0_53 = arith.constant 0 : index
      %67 = vector.load %arg11[%c0_52, %c0_53] : memref<16x8xbf16, #tpu.memory_space<vmem>>, vector<16x8xbf16>
      %cst_54 = arith.constant dense<0.000000e+00> : vector<2x8xf32>
      %68 = tpu.matmul %66, %67, %cst_54 {dimension_numbers = #tpu.dot_dimension_numbers<[1], [0], [0], [1], [0, 0, 1, 1], [], []>} : vector<2x16xbf16>, vector<16x8xbf16>, vector<2x8xf32> -> vector<2x8xf32>
      %c0_55 = arith.constant 0 : index
      %c0_56 = arith.constant 0 : index
      %69 = vector.load %arg12[%c0_55, %c0_56] : memref<1x8xf32, #tpu.memory_space<vmem>>, vector<1x8xf32>
      %70 = vector.broadcast %69 : vector<1x8xf32> to vector<2x8xf32>
      %71 = arith.addf %68, %70 : vector<2x8xf32>
      %cst_57 = arith.constant 0.000000e+00 : f32
      %72 = vector.broadcast %cst_57 : f32 to vector<2x8xf32>
      %73 = arith.cmpf ogt, %71, %72 : vector<2x8xf32>
      %cst_58 = arith.constant 0.00999999977 : f32
      %74 = vector.broadcast %cst_58 : f32 to vector<2x8xf32>
      %75 = arith.mulf %74, %71 : vector<2x8xf32>
      %76 = arith.select %73, %71, %75 : vector<2x8xi1>, vector<2x8xf32>
      %77 = arith.truncf %76 : vector<2x8xf32> to vector<2x8xbf16>
      %c0_59 = arith.constant 0 : index
      %c0_60 = arith.constant 0 : index
      %78 = vector.load %arg13[%c0_59, %c0_60] : memref<8x1xbf16, #tpu.memory_space<vmem>>, vector<8x1xbf16>
      %cst_61 = arith.constant dense<0.000000e+00> : vector<2x1xf32>
      %79 = tpu.matmul %77, %78, %cst_61 {dimension_numbers = #tpu.dot_dimension_numbers<[1], [0], [0], [1], [0, 0, 1, 1], [], []>} : vector<2x8xbf16>, vector<8x1xbf16>, vector<2x1xf32> -> vector<2x1xf32>
      %c0_62 = arith.constant 0 : index
      %c0_63 = arith.constant 0 : index
      %80 = vector.load %arg14[%c0_62, %c0_63] : memref<1x1xf32, #tpu.memory_space<vmem>>, vector<1x1xf32>
      %81 = vector.broadcast %80 : vector<1x1xf32> to vector<2x1xf32>
      %82 = arith.addf %79, %81 : vector<2x1xf32>
      %c0_64 = arith.constant 0 : index
      %c0_65 = arith.constant 0 : index
      %83 = vector.load %arg17[%c0_64, %c0_65] : memref<32x32xbf16, #tpu.memory_space<vmem>>, vector<32x32xbf16>
      %cst_66 = arith.constant dense<0.000000e+00> : vector<2x32xf32>
      %84 = tpu.matmul %55, %83, %cst_66 {dimension_numbers = #tpu.dot_dimension_numbers<[1], [0], [0], [1], [0, 0, 1, 1], [], []>} : vector<2x32xbf16>, vector<32x32xbf16>, vector<2x32xf32> -> vector<2x32xf32>
      %c0_67 = arith.constant 0 : index
      %c0_68 = arith.constant 0 : index
      %85 = vector.load %arg16[%c0_67, %c0_68] : memref<32x32xbf16, #tpu.memory_space<vmem>>, vector<32x32xbf16>
      %cst_69 = arith.constant dense<0.000000e+00> : vector<2x32xf32>
      %86 = tpu.matmul %54, %85, %cst_69 {dimension_numbers = #tpu.dot_dimension_numbers<[1], [0], [0], [1], [0, 0, 1, 1], [], []>} : vector<2x32xbf16>, vector<32x32xbf16>, vector<2x32xf32> -> vector<2x32xf32>
      %87 = arith.addf %84, %86 : vector<2x32xf32>
      %c0_70 = arith.constant 0 : index
      %c0_71 = arith.constant 0 : index
      %88 = vector.load %arg18[%c0_70, %c0_71] : memref<1x32xf32, #tpu.memory_space<vmem>>, vector<1x32xf32>
      %89 = vector.broadcast %88 : vector<1x32xf32> to vector<2x32xf32>
      %90 = arith.addf %87, %89 : vector<2x32xf32>
      %91 = arith.truncf %90 : vector<2x32xf32> to vector<2x32xbf16>
      %c0_72 = arith.constant 0 : index
      %c0_73 = arith.constant 0 : index
      %92 = vector.load %arg23[%c0_72, %c0_73] : memref<2x32xbf16, #tpu.memory_space<vmem>>, vector<2x32xbf16>
      tpu.vector_store %arg23[%c0_72, %c0_73], %91 {strides = array<i32>} : memref<2x32xbf16, #tpu.memory_space<vmem>>, vector<2x32xbf16>,
      %c0_74 = arith.constant 0 : index
      %c0_75 = arith.constant 0 : index
      %93 = vector.load %arg21[%c0_74, %c0_75] : memref<2x1xf32, #tpu.memory_space<vmem>>, vector<2x1xf32>
      tpu.vector_store %arg21[%c0_74, %c0_75], %82 {strides = array<i32>} : memref<2x1xf32, #tpu.memory_space<vmem>>, vector<2x1xf32>,
    } else {
    }
    %c0 = arith.constant 0 : index
    %c0_1 = arith.constant 0 : index
    %3 = vector.load %arg3[%c0, %c0_1] : memref<16x8xbf16, #tpu.memory_space<vmem>>, vector<16x8xbf16>
    %c0_2 = arith.constant 0 : index
    %c0_3 = arith.constant 0 : index
    %4 = vector.load %arg22[%c0_2, %c0_3] : memref<8x32xbf16, #tpu.memory_space<vmem>>, vector<8x32xbf16>
    %cst = arith.constant dense<0.000000e+00> : vector<16x32xf32>
    %5 = tpu.matmul %3, %4, %cst {dimension_numbers = #tpu.dot_dimension_numbers<[1], [0], [0], [1], [0, 0, 1, 1], [], []>} : vector<16x8xbf16>, vector<8x32xbf16>, vector<16x32xf32> -> vector<16x32xf32>
    %c0_4 = arith.constant 0 : index
    %c0_5 = arith.constant 0 : index
    %6 = vector.load %arg5[%c0_4, %c0_5] : memref<16x2xbf16, #tpu.memory_space<vmem>>, vector<16x2xbf16>
    %c0_6 = arith.constant 0 : index
    %c0_7 = arith.constant 0 : index
    %7 = vector.load %arg23[%c0_6, %c0_7] : memref<2x32xbf16, #tpu.memory_space<vmem>>, vector<2x32xbf16>
    %cst_8 = arith.constant dense<0.000000e+00> : vector<16x32xf32>
    %8 = tpu.matmul %6, %7, %cst_8 {dimension_numbers = #tpu.dot_dimension_numbers<[1], [0], [0], [1], [0, 0, 1, 1], [], []>} : vector<16x2xbf16>, vector<2x32xbf16>, vector<16x32xf32> -> vector<16x32xf32>
    %9 = arith.truncf %5 : vector<16x32xf32> to vector<16x32xbf16>
    %c0_9 = arith.constant 0 : index
    %c0_10 = arith.constant 0 : index
    %10 = vector.load %arg15[%c0_9, %c0_10] : memref<32x32xbf16, #tpu.memory_space<vmem>>, vector<32x32xbf16>
    %cst_11 = arith.constant dense<0.000000e+00> : vector<16x32xf32>
    %11 = tpu.matmul %9, %10, %cst_11 {dimension_numbers = #tpu.dot_dimension_numbers<[1], [0], [0], [1], [0, 0, 1, 1], [], []>} : vector<16x32xbf16>, vector<32x32xbf16>, vector<16x32xf32> -> vector<16x32xf32>
    %12 = arith.addf %11, %8 : vector<16x32xf32>
    %cst_12 = arith.constant 0.000000e+00 : f32
    %13 = vector.broadcast %cst_12 : f32 to vector<16x32xf32>
    %14 = arith.maximumf %12, %13 : vector<16x32xf32>
    %15 = arith.truncf %14 : vector<16x32xf32> to vector<16x32xbf16>
    %c0_13 = arith.constant 0 : index
    %c0_14 = arith.constant 0 : index
    %16 = vector.load %arg19[%c0_13, %c0_14] : memref<32x2xbf16, #tpu.memory_space<vmem>>, vector<32x2xbf16>
    %cst_15 = arith.constant dense<0.000000e+00> : vector<16x2xf32>
    %17 = tpu.matmul %15, %16, %cst_15 {dimension_numbers = #tpu.dot_dimension_numbers<[1], [0], [0], [1], [0, 0, 1, 1], [], []>} : vector<16x32xbf16>, vector<32x2xbf16>, vector<16x2xf32> -> vector<16x2xf32>
    %c0_16 = arith.constant 0 : index
    %c0_17 = arith.constant 0 : index
    %18 = vector.load %arg20[%c0_16, %c0_17] : memref<1x2xf32, #tpu.memory_space<vmem>>, vector<1x2xf32>
    %19 = vector.broadcast %18 : vector<1x2xf32> to vector<16x2xf32>
    %20 = arith.addf %17, %19 : vector<16x2xf32>
    %21 = vector.extract_strided_slice %20 {offsets = [0, 0], sizes = [16, 1], strides = [1, 1]} : vector<16x2xf32> to vector<16x1xf32>
    %22 = math.tanh %21 : vector<16x1xf32>
    %23 = vector.extract_strided_slice %20 {offsets = [0, 1], sizes = [16, 1], strides = [1, 1]} : vector<16x2xf32> to vector<16x1xf32>
    %24 = arith.negf %23 : vector<16x1xf32>
    %25 = math.exp %24 : vector<16x1xf32>
    %cst_18 = arith.constant 1.000000e+00 : f32
    %26 = vector.broadcast %cst_18 : f32 to vector<16x1xf32>
    %27 = arith.addf %26, %25 : vector<16x1xf32>
    %28 = arith.divf %26, %27 : vector<16x1xf32>
    %cst_19 = arith.constant 2.000000e+00 : f32
    %29 = vector.broadcast %cst_19 : f32 to vector<16x1xf32>
    %30 = arith.mulf %29, %28 : vector<16x1xf32>
    %31 = arith.mulf %22, %30 : vector<16x1xf32>
    %c0_20 = arith.constant 0 : index
    %c0_21 = arith.constant 0 : index
    %32 = vector.load %arg5[%c0_20, %c0_21] : memref<16x2xbf16, #tpu.memory_space<vmem>>, vector<16x2xbf16>
    %33 = arith.extf %32 : vector<16x2xbf16> to vector<16x2xf32>
    %cst_22 = arith.constant dense<0.000000e+00> : vector<2x1xf32>
    %34 = tpu.matmul %33, %31, %cst_22 {dimension_numbers = #tpu.dot_dimension_numbers<[0], [0], [1], [1], [0, 1, 1, 1], [], []>} : vector<16x2xf32>, vector<16x1xf32>, vector<2x1xf32> -> vector<2x1xf32>
    %c0_23 = arith.constant 0 : index
    %c0_24 = arith.constant 0 : index
    %35 = vector.load %arg21[%c0_23, %c0_24] : memref<2x1xf32, #tpu.memory_space<vmem>>, vector<2x1xf32>
    %36 = arith.addf %35, %34 : vector<2x1xf32>
    %c0_25 = arith.constant 0 : index
    %c0_26 = arith.constant 0 : index
    %37 = vector.load %arg21[%c0_25, %c0_26] : memref<2x1xf32, #tpu.memory_space<vmem>>, vector<2x1xf32>
    tpu.vector_store %arg21[%c0_25, %c0_26], %36 {strides = array<i32>} : memref<2x1xf32, #tpu.memory_space<vmem>>, vector<2x1xf32>,
    return
  }
  func.func @transform_0(%arg0: i32) -> (i32, i32) {
    %c0_i32 = arith.constant 0 : i32
    %c0_i32_0 = arith.constant 0 : i32
    %c0_i32_1 = arith.constant 0 : i32
    return %c0_i32, %c0_i32_0 : i32, i32
  }
  func.func @transform_1(%arg0: i32) -> (i32, i32) {
    %c0_i32 = arith.constant 0 : i32
    %c0_i32_0 = arith.constant 0 : i32
    %c0_i32_1 = arith.constant 0 : i32
    return %c0_i32, %c0_i32_0 : i32, i32
  }
  func.func @transform_2(%arg0: i32) -> (i32, i32) {
    %c0_i32 = arith.constant 0 : i32
    %c0_i32_0 = arith.constant 0 : i32
    return %arg0, %c0_i32 : i32, i32
  }
  func.func @transform_3(%arg0: i32) -> (i32, i32) {
    %c0_i32 = arith.constant 0 : i32
    %c0_i32_0 = arith.constant 0 : i32
    %c0_i32_1 = arith.constant 0 : i32
    return %c0_i32, %c0_i32_0 : i32, i32
  }
  func.func @transform_4(%arg0: i32) -> (i32, i32) {
    %c0_i32 = arith.constant 0 : i32
    %c0_i32_0 = arith.constant 0 : i32
    return %arg0, %c0_i32 : i32, i32
  }
  func.func @transform_5(%arg0: i32) -> (i32, i32) {
    %c0_i32 = arith.constant 0 : i32
    %c0_i32_0 = arith.constant 0 : i32
    %c0_i32_1 = arith.constant 0 : i32
    return %c0_i32, %c0_i32_0 : i32, i32
  }
  func.func @transform_6(%arg0: i32) -> (i32, i32) {
    %c0_i32 = arith.constant 0 : i32
    %c0_i32_0 = arith.constant 0 : i32
    %c0_i32_1 = arith.constant 0 : i32
    return %c0_i32, %c0_i32_0 : i32, i32
  }
  func.func @transform_7(%arg0: i32) -> (i32, i32) {
    %c0_i32 = arith.constant 0 : i32
    %c0_i32_0 = arith.constant 0 : i32
    %c0_i32_1 = arith.constant 0 : i32
    return %c0_i32, %c0_i32_0 : i32, i32
  }
  func.func @transform_8(%arg0: i32) -> (i32, i32) {
    %c0_i32 = arith.constant 0 : i32
    %c0_i32_0 = arith.constant 0 : i32
    %c0_i32_1 = arith.constant 0 : i32
    return %c0_i32, %c0_i32_0 : i32, i32
  }
  func.func @transform_9(%arg0: i32) -> (i32, i32) {
    %c0_i32 = arith.constant 0 : i32
    %c0_i32_0 = arith.constant 0 : i32
    %c0_i32_1 = arith.constant 0 : i32
    return %c0_i32, %c0_i32_0 : i32, i32
  }
  func.func @transform_10(%arg0: i32) -> (i32, i32) {
    %c0_i32 = arith.constant 0 : i32
    %c0_i32_0 = arith.constant 0 : i32
    %c0_i32_1 = arith.constant 0 : i32
    return %c0_i32, %c0_i32_0 : i32, i32
  }
  func.func @transform_11(%arg0: i32) -> (i32, i32) {
    %c0_i32 = arith.constant 0 : i32
    %c0_i32_0 = arith.constant 0 : i32
    %c0_i32_1 = arith.constant 0 : i32
    return %c0_i32, %c0_i32_0 : i32, i32
  }
  func.func @transform_12(%arg0: i32) -> (i32, i32) {
    %c0_i32 = arith.constant 0 : i32
    %c0_i32_0 = arith.constant 0 : i32
    %c0_i32_1 = arith.constant 0 : i32
    return %c0_i32, %c0_i32_0 : i32, i32
  }
  func.func @transform_13(%arg0: i32) -> (i32, i32) {
    %c0_i32 = arith.constant 0 : i32
    %c0_i32_0 = arith.constant 0 : i32
    %c0_i32_1 = arith.constant 0 : i32
    return %c0_i32, %c0_i32_0 : i32, i32
  }
  func.func @transform_14(%arg0: i32) -> (i32, i32) {
    %c0_i32 = arith.constant 0 : i32
    %c0_i32_0 = arith.constant 0 : i32
    %c0_i32_1 = arith.constant 0 : i32
    return %c0_i32, %c0_i32_0 : i32, i32
  }
  func.func @transform_15(%arg0: i32) -> (i32, i32) {
    %c0_i32 = arith.constant 0 : i32
    %c0_i32_0 = arith.constant 0 : i32
    %c0_i32_1 = arith.constant 0 : i32
    return %c0_i32, %c0_i32_0 : i32, i32
  }
  func.func @transform_16(%arg0: i32) -> (i32, i32) {
    %c0_i32 = arith.constant 0 : i32
    %c0_i32_0 = arith.constant 0 : i32
    %c0_i32_1 = arith.constant 0 : i32
    return %c0_i32, %c0_i32_0 : i32, i32
  }
  func.func @transform_17(%arg0: i32) -> (i32, i32) {
    %c0_i32 = arith.constant 0 : i32
    %c0_i32_0 = arith.constant 0 : i32
    %c0_i32_1 = arith.constant 0 : i32
    return %c0_i32, %c0_i32_0 : i32, i32
  }
  func.func @transform_18(%arg0: i32) -> (i32, i32) {
    %c0_i32 = arith.constant 0 : i32
    %c0_i32_0 = arith.constant 0 : i32
    %c0_i32_1 = arith.constant 0 : i32
    return %c0_i32, %c0_i32_0 : i32, i32
  }
  func.func @transform_19(%arg0: i32) -> (i32, i32) {
    %c0_i32 = arith.constant 0 : i32
    %c0_i32_0 = arith.constant 0 : i32
    %c0_i32_1 = arith.constant 0 : i32
    return %c0_i32, %c0_i32_0 : i32, i32
  }
  func.func @transform_20(%arg0: i32) -> (i32, i32) {
    %c0_i32 = arith.constant 0 : i32
    %c0_i32_0 = arith.constant 0 : i32
    %c0_i32_1 = arith.constant 0 : i32
    return %c0_i32, %c0_i32_0 : i32, i32
  }
}

</mosaic_0001>

<bundles_post_ra>
// kernel: tpu_custom_call.1
= control target key start
LH: loop header
LB: loop body
LE: loop exit
PB: predicated region body
PF: predicated region fallthrough
CT: control target
= control target key end

     0   :  { %s1937_s23 = smov 0   ;;  %s2085_s0 = inlined_call_operand.vmem [shape: bf16[8,8], index: 0, kind: input, shape index: {}]   ;;  %s2086_s1 = inlined_call_operand.vmem [shape: bf16[8,8], index: 1, kind: input, shape index: {}]   ;;  %s2087_s2 = inlined_call_operand.vmem [shape: bf16[32,8], index: 2, kind: input, shape index: {}]   ;;  %s2088_s3 = inlined_call_operand.vmem [shape: bf16[2,8], index: 3, kind: input, shape index: {}]   ;;  %s2089_s4 = inlined_call_operand.vmem [shape: bf16[32,2], index: 4, kind: input, shape index: {}]   ;;  %s2090_s5 = inlined_call_operand.vmem [shape: bf16[2,8], index: 5, kind: input, shape index: {}]   ;;  %s2091_s6 = inlined_call_operand.vmem [shape: bf16[8,64], index: 6, kind: input, shape index: {}]   ;;  %s2092_s7 = inlined_call_operand.vmem [shape: bf16[8,32], index: 7, kind: input, shape index: {}]   ;;  %s2093_s8 = inlined_call_operand.vmem [shape: bf16[32,16], index: 8, kind: input, shape index: {}]   ;;  %s2094_s9 = inlined_call_operand.vmem [shape: f32[1,16], index: 9, kind: input, shape index: {}]   ;;  %s2095_s10 = inlined_call_operand.vmem [shape: bf16[16,8], index: 10, kind: input, shape index: {}]   ;;  %s2096_s11 = inlined_call_operand.vmem [shape: f32[1,8], index: 11, kind: input, shape index: {}]   ;;  %s2097_s12 = inlined_call_operand.vmem [shape: bf16[8,1], index: 12, kind: input, shape index: {}]   ;;  %s2098_s13 = inlined_call_operand.<no memory space> [shape: f32[1,1], index: 13, kind: input, shape index: {}]   ;;  %s2099_s14 = inlined_call_operand.vmem [shape: bf16[32,32], index: 14, kind: input, shape index: {}]   ;;  %s2100_s15 = inlined_call_operand.vmem [shape: bf16[32,32], index: 15, kind: input, shape index: {}]   ;;  %s2101_s16 = inlined_call_operand.vmem [shape: bf16[32,32], index: 16, kind: input, shape index: {}]   ;;  %s2102_s17 = inlined_call_operand.vmem [shape: f32[1,32], index: 17, kind: input, shape index: {}]   ;;  %s2103_s18 = inlined_call_operand.vmem [shape: bf16[32,2], index: 18, kind: input, shape index: {}]   ;;  %s2104_s19 = inlined_call_operand.vmem [shape: f32[1,2], index: 19, kind: input, shape index: {}]   ;;  %s2105_s20 = inlined_call_operand.vmem [shape: f32[2,1], index: 20, kind: output, shape index: {}]  }
   0x1   :  { %2106 = sst [smem:[#allocation5_spill]] %s2085_s0  ;;  %v25_v0 = vstv %s2098_s13 }
   0x2   :  { %2107 = sst [smem:[#allocation6_spill]] %s2086_s1  ;;  %26 = vst [vmem:[#allocation4] sm:$0x1] %v25_v0 }
   0x3   :  { %2108 = sst [smem:[#allocation7_spill]] %s2087_s2 }
   0x4   :  { %2109 = sst [smem:[#allocation8_spill]] %s2088_s3 }
   0x5   :  { %2110 = sst [smem:[#allocation9_spill]] %s2089_s4 }
   0x6 LB: > { %s1590_s24 = sadd.s32 4294967295, %s1820_s23   ;;  %p1593_p0 = scmp.ge.s32.totalorder %s1820_s23, 1  ;;  %s1820_s23 = sphi %s1937_s23, %s32_s23  }
   0x7   : > { %p571_p1 = scmp.lt.s32.totalorder %s1820_s23, 3 }
   0x9   : > { %p572_p2 = pnand %p1593_p0, %p571_p1 }
   0xa   : > { %s1594_s2 = sshll.u32 (!%p572_p2), %s1590_s24, 1  ;;  %s2111_s26 = sld [smem:[#allocation7_spill]] (!%p572_p2) }
   0xb   : > { %575 = sbr.rel (%p572_p2) target bundleno = 2147 (0x863), region = 100  ;;  %p630_p3 = scmp.lt.s32.totalorder (!%p572_p2), %s1594_s2, 3 }
   0xc   : > { %s2112_s29 = sld [smem:[#allocation9_spill]] (!%p572_p2)  ;;  %p1598_p4 = scmp.ne.s32.totalorder (!%p572_p2), %s1590_s24, 0 }
  0x12   : > { %s2117_s2 = smov (!%p630_p3, %s1594_s2), 3  ;;  %645 = sbr.rel (%p1598_p4) target bundleno = 1125 (0x465), region = 104 }
  0x13   : > { %s1595_s13 = sshll.u32 %s2117_s2, 2  ;;  %v647_v1 = vld [vmem:[%s2091_s6] sm:$0xf] (!%p1598_p4)  ;;  %vm652_vm0 = vcmask (!%p1598_p4), 1043456   ;;  %v1822_v2 = vmov (!%p1598_p4), 0.0   ;;  %vm1823_vm1 = vmmov (!%p1598_p4), 0  }
  0x14   : > { %s1948_s27 = scalar_lea.vmem %s2111_s26, %s1595_s13  ;;  %s1953_s30 = scalar_lea.vmem %s2112_s29, %s1595_s13  ;;  %1671 = vmatprep.subr.bf16.mxu0 (!%p1598_p4), %v1822_v2  ;;  %v654_v3 = vsel (!%p1598_p4), %vm652_vm0, %v647_v1, 0  ;;  %1673 = vmatprep.mubr.msk.bf16.mxu0 (!%p1598_p4), %vm1823_vm1, %v1822_v2  ;;  %vm648_vm2 = vcmask (!%p1598_p4), 64512   ;;  %v706_v5 = vld [vmem:[%s2092_s7] sm:$0xf] (!%p1598_p4)  ;;  %v1789_v16 = vld [vmem:[%s2093_s8 + $0x8] sm:$0xff] (!%p1598_p4)   ;;  %vm703_vm3 = vcmask (!%p1598_p4), 257024  }
  0x15   : > { %s2113_s2 = sld [smem:[#allocation5_spill]] (!%p1598_p4)  ;;  %1672 = vmatpush3.bf16.msra.mxu0 (!%p1598_p4), %v654_v3  ;;  %1677 = vmatprep.subr.bf16.mxu1 (!%p1598_p4), %v1822_v2  ;;  %v711_v6 = vsel (!%p1598_p4), %vm652_vm0, %v706_v5, 0  ;;  %s2114_s26 = sld [smem:[#allocation6_spill]] (!%p1598_p4)  ;;  %v1788_v15 = vld [vmem:[%s2093_s8] sm:$0xff] (!%p1598_p4)   ;;  %vm873_vm4 = vcmask (!%p1598_p4), 261120   ;;  %vm936_vm6 = vcmask (!%p1598_p4), 130048  }
  0x16   : > { %1683 = vmatprep.subr.bf16.mxu0 (!%p1598_p4), %v1822_v2  ;;  %1679 = vmatprep.mubr.msk.bf16.mxu1 (!%p1598_p4), %vm1823_vm1, %v1822_v2  ;;  %s1824_s28 = smov (!%p1598_p4), 96   ;;  %s2115_s0 = sld [smem:[#allocation8_spill]] (!%p1598_p4)  ;;  %v801_v24 = vld [vmem:[%s2090_s5] sm:$0x1] (!%p1598_p4)  ;;  %v1792_v45 = vld [vmem:[%s2100_s15 + $0x8] sm:$0xff] (!%p1598_p4)   ;;  %vm1164_vm8 = vcmask (!%p1598_p4), 1024  }
  0x17   : > { %1678 = vmatpush3.bf16.msra.mxu1 (!%p1598_p4), %v711_v6  ;;  %v1790_v30 = vld [vmem:[%s2095_s10] sm:$0xff] (!%p1598_p4)   ;;  %v1794_v60 = vld [vmem:[%s2101_s16 + $0x8] sm:$0xff] (!%p1598_p4)   ;;  %vm1162_vm9 = vcmask (!%p1598_p4), 253952  }
  0x18   : > { %1689 = vmatprep.subr.bf16.mxu1 (!%p1598_p4), %v1822_v2  ;;  %v1604_v35 = vld [vmem:[%s2094_s9] ss:$0 sm:$0xff] (!%p1598_p4)  ;;  %v1611_v0 = vld [vmem:[#allocation4] ss:$0 sm:$0xff] (!%p1598_p4) }
  0x19   : > { %v1791_v43 = vld [vmem:[%s2100_s15] sm:$0xff]  }
  0x1a   : > { %v984_v46 = vld [vmem:[%s2097_s12] sm:$0xf] }
  0x1b   : > { %v646_v4 = vld [vmem:[%s2113_s2] sm:$0xf]  ;;  %v996_v47 = vsel %vm652_vm0, %v984_v46, 0 }
  0x1c   : > { %1674 = vmatmul.mubr.msk.bf16.vlgmr.msra.gmra.mrb[0].mxu0 %vm648_vm2, %v646_v4  ;;  %v705_v7 = vld [vmem:[%s2114_s26] sm:$0xf] }
  0x1d   : > { %1685 = vmatprep.mubr.msk.bf16.mxu0 %vm1823_vm1, %v1822_v2  ;;  %1680 = vmatmul.mubr.msk.bf16.vlgmr.msra.gmra.mrb[0].mxu1 %vm648_vm2, %v705_v7  ;;  %v754_v14 = vld [vmem:[%s2115_s0] sm:$0x1] }
  0x1e   : > { %1691 = vmatprep.mubr.msk.bf16.mxu1 %vm1823_vm1, %v1822_v2  ;;  %v1608_v48 = vld [vmem:[%s2096_s11] ss:$0 sm:$0xff] }
  0x1f   : > { %v1793_v56 = vld [vmem:[%s2101_s16] sm:$0xff]  }
  0xef   : > { %v690_v8 = vpop.f32.mrb[0].mxu0 }
  0xf0   : > { %v696_v9 = vpack.c.bf16 %v690_v8, %v690_v8  ;;  %v1675_v10 = vpop.f32.mrb[1].mxu0  ;;  %v747_v18 = vpop.f32.mrb[0].mxu1 }
  0xf1   : > { %v693_v11 = vpop.f32.mrb[2].mxu0  ;;  %v753_v19 = vpack.c.bf16 %v747_v18, %v747_v18  ;;  %v1681_v20 = vpop.f32.mrb[1].mxu1 }
  0xf2   : > { %v759_v12 = vsel %vm652_vm0, %v696_v9, 0  ;;  %v1676_v13 = vpop.f32.mrb[3].mxu0  ;;  %700 = vrot.lane.b32.xlu0 %v696_v9, %s1824_s28  ;;  %v750_v21 = vpop.f32.mrb[2].mxu1 }
  0xf3   : > { %1684 = vmatpush3.bf16.msra.mxu0 %v759_v12  ;;  %v806_v22 = vsel %vm652_vm0, %v753_v19, 0  ;;  %v1682_v23 = vpop.f32.mrb[3].mxu1 }
  0xf4   : > { %1695 = vmatprep.subr.bf16.mxu0 %v1822_v2  ;;  %1690 = vmatpush3.bf16.msra.mxu1 %v806_v22 }
  0xf5   : > { %1703 = vmatprep.subr.bf16.mxu1 %v1822_v2 }
  0xf6   : > { %1686 = vmatmul.mubr.msk.bf16.vlgmr.msra.gmra.mrb[4].mxu0 %vm648_vm2, %v754_v14 }
  0xf7   : > { %1696 = vmatpush3.bf16.msra.mxu0 %v1788_v15  ;;  %1699 = vmatprep.mubr.msk.bf16.mxu0 %vm1823_vm1, %v1822_v2 }
  0xf8   : > { %1697 = vmatprep.subr.bf16.mxu0 %v1822_v2  ;;  %1692 = vmatmul.mubr.msk.bf16.vlgmr.msra.gmra.mrb[4].mxu1 %vm648_vm2, %v801_v24 }
  0xf9   : > { %1705 = vmatprep.mubr.msk.bf16.mxu1 %vm1823_vm1, %v1822_v2  ;;  %1704 = vmatpush3.bf16.msra.mxu1 %v1790_v30 }
  0xfa   : > { %1715 = vmatprep.subr.bf16.mxu1 %v1822_v2 }
  0xfb   : > { %1698 = vmatpush3.bf16.msra.mxu0 %v1789_v16 }
  0xfc   : > { %1709 = vmatprep.subr.bf16.mxu0 %v1822_v2 }
 0x164   : > { %v701_v17 = vpop.permute.xlu0 %700 }
 0x165   : > { %704 = vst.msk [vmem:[#allocation2] sm:$0xf] %vm703_vm3, %v701_v17 }
 0x1c9   : > { %v795_v25 = vpop.f32.mrb[4].mxu0 }
 0x1ca   : > { %v848_v26 = vpack.c.bf16 %v795_v25, %v795_v25  ;;  %v1687_v27 = vpop.f32.mrb[5].mxu0 }
 0x1cb   : > { %v798_v28 = vpop.f32.mrb[6].mxu0  ;;  %v842_v31 = vpop.f32.mrb[4].mxu1 }
 0x1cc   : > { %1700 = vmatmul.mubr.msk.bf16.vlgmr.msra.gmra.mrb[8].mxu0 %vm873_vm4, %v848_v26  ;;  %v1688_v29 = vpop.f32.mrb[7].mxu0  ;;  %v1693_v32 = vpop.f32.mrb[5].mxu1  ;;  %v849_v63 = vpack.c.bf16 %v842_v31, %v842_v31 }
 0x1cd   : > { %1711 = vmatprep.mubr.msk.bf16.mxu0 %vm1823_vm1, %v1822_v2  ;;  %v845_v33 = vpop.f32.mrb[6].mxu1  ;;  %1710 = vmatpush3.bf16.msra.mxu0 %v996_v47 }
 0x1ce   : > { %v1694_v34 = vpop.f32.mrb[7].mxu1  ;;  %1723 = vmatprep.subr.bf16.mxu0 %v1822_v2 }
 0x29f   : > { %v911_v36 = vpop.f32.mrb[8].mxu0 }
 0x2a0   : > { %v912_v37 = vadd.f32 %v1604_v35, %v911_v36  ;;  %v1701_v38 = vpop.f32.mrb[9].mxu0 }
 0x2a1   : > { %v914_v39 = vpop.f32.mrb[10].mxu0 }
 0x2a2   : > { %vm917_vm5 = vcmp.gt.f32.partialorder %v912_v37, 0.0  ;;  %v918_v40 = vmul.f32 0.01, %v912_v37  ;;  %v1702_v41 = vpop.f32.mrb[11].mxu0 }
 0x2a4   : > { %v919_v42 = vsel %vm917_vm5, %v912_v37, %v918_v40 }
 0x2a5   : > { %v920_v44 = vpack.c.bf16 %v919_v42, %v919_v42 }
 0x2a7   : > { %1706 = vmatmul.mubr.msk.bf16.vlgmr.msra.gmra.mrb[8].mxu1 %vm936_vm6, %v920_v44 }
 0x2a8   : > { %1716 = vmatpush3.bf16.msra.mxu1 %v1791_v43  ;;  %1719 = vmatprep.mubr.msk.bf16.mxu1 %vm1823_vm1, %v1822_v2 }
 0x2a9   : > { %1717 = vmatprep.subr.bf16.mxu1 %v1822_v2 }
 0x2ac   : > { %1718 = vmatpush3.bf16.msra.mxu1 %v1792_v45 }
 0x2af   : > { %1720 = vmatmul.mubr.msk.bf16.vlgmr.msra.gmra.mrb[12].mxu1 %vm873_vm4, %v848_v26 }
 0x37a   : > { %v974_v49 = vpop.f32.mrb[8].mxu1 }
 0x37b   : > { %v975_v50 = vadd.f32 %v1608_v48, %v974_v49  ;;  %v1707_v51 = vpop.f32.mrb[9].mxu1 }
 0x37c   : > { %v977_v52 = vpop.f32.mrb[10].mxu1 }
 0x37d   : > { %vm980_vm7 = vcmp.gt.f32.partialorder %v975_v50, 0.0  ;;  %v981_v53 = vmul.f32 0.01, %v975_v50  ;;  %v1708_v54 = vpop.f32.mrb[11].mxu1 }
 0x37f   : > { %v982_v55 = vsel %vm980_vm7, %v975_v50, %v981_v53 }
 0x380   : > { %v983_v57 = vpack.c.bf16 %v982_v55, %v982_v55 }
 0x382   : > { %1712 = vmatmul.mubr.msk.bf16.vlgmr.msra.gmra.mrb[12].mxu0 %vm648_vm2, %v983_v57  ;;  %v1092_v58 = vpop.f32.mrb[12].mxu1 }
 0x383   : > { %v1721_v59 = vpop.f32.mrb[13].mxu1  ;;  %1724 = vmatpush3.bf16.msra.mxu0 %v1793_v56  ;;  %1727 = vmatprep.mubr.msk.bf16.mxu0 %vm1823_vm1, %v1822_v2 }
 0x384   : > { %v1095_v61 = vpop.f32.mrb[14].mxu1  ;;  %1725 = vmatprep.subr.bf16.mxu0 %v1822_v2  ;;  %v1619_v2 = vld [vmem:[%s2102_s17] ss:$0 sm:$0xff] }
 0x385   : > { %v1722_v62 = vpop.f32.mrb[15].mxu1 }
 0x387   : > { %1726 = vmatpush3.bf16.msra.mxu0 %v1794_v60 }
 0x38a   : > { %1728 = vmatmul.mubr.msk.bf16.vlgmr.msra.gmra.mrb[16].mxu0 %vm873_vm4, %v849_v63 }
 0x455   : > { %v1032_v1 = vpop.f32.mrb[12].mxu0 }
 0x456   : > { %v1033_v3 = vadd.f32 %v1611_v0, %v1032_v1  ;;  %v1713_v4 = vpop.f32.mrb[13].mxu0 }
 0x457   : > { %v1035_v5 = vpop.f32.mrb[14].mxu0 }
 0x458   : > { %1165 = vst.msk [vmem:[%s2105_s20] sm:$0x3] %vm1164_vm8, %v1033_v3  ;;  %v1714_v6 = vpop.f32.mrb[15].mxu0 }
 0x45d   : > { %v1147_v7 = vpop.f32.mrb[16].mxu0 }
 0x45e   : > { %v1148_v8 = vadd.f32 %v1147_v7, %v1092_v58  ;;  %v1729_v9 = vpop.f32.mrb[17].mxu0 }
 0x45f   : > { %v1150_v10 = vpop.f32.mrb[18].mxu0 }
 0x460   : > { %v1160_v11 = vadd.f32 %v1619_v2, %v1148_v8  ;;  %v1730_v12 = vpop.f32.mrb[19].mxu0 }
 0x462   : > { %v1161_v13 = vpack.c.bf16 %v1160_v11, %v1160_v11 }
 0x464   : > { %1163 = vst.msk [vmem:[#allocation3] sm:$0x1] %vm1162_vm9, %v1161_v13 }
 0x465 PF: > { %v1168_v14 = vld [vmem:[#allocation2] sm:$0xf]  ;;  %vm1178_vm10 = vcmask 1043456   ;;  %v1825_v15 = vmov 0.0   ;;  %vm1826_vm11 = vmmov 0   ;;  %vm1174_vm12 = vcmask 64512  }
 0x466   : > { %1731 = vmatprep.subr.bf16.mxu0 %v1825_v15  ;;  %v1180_v16 = vsel %vm1178_vm10, %v1168_v14, 0  ;;  %1733 = vmatprep.mubr.msk.bf16.mxu0 %vm1826_vm11, %v1825_v15  ;;  %v1795_v17 = vld [vmem:[%s1948_s27] sm:$0xff]   ;;  %vm1235_vm13 = vcmask 1040384   ;;  %vm1231_vm14 = vcmask 15360   ;;  %v1798_v22 = vld [vmem:[%s2099_s14 + $0x8] sm:$0xff]   ;;  %vm1297_vm15 = vcmask 261120  }
 0x467   : > { %1732 = vmatpush3.bf16.msra.mxu0 %v1180_v16  ;;  %1737 = vmatprep.subr.bf16.mxu1 %v1825_v15  ;;  %v1223_v19 = vld [vmem:[%s1953_s30] sm:$0xff]   ;;  %v1800_v29 = vld [vmem:[%s2103_s18 + $0x8] sm:$0xff]   ;;  %v1827_v52 = vmov 0.0|0.0   ;;  %s1828_s26 = smov 127   ;;  %vm1472_vm0 = vcmask 130048   ;;  %vm1548_vm1 = vcmask 1024  }
 0x468   : > { %1739 = vmatprep.mubr.msk.bf16.mxu1 %vm1826_vm11, %v1825_v15  ;;  %v1797_v21 = vld [vmem:[%s2099_s14] sm:$0xff]   ;;  %1751 = vmatprep.subr.bf16.mxu0 %v1825_v15  ;;  %v1438_v37 = vunpack.c.l.bf16 %v1223_v19  ;;  %v1439_v38 = vunpack.c.h.bf16 %v1223_v19 }
 0x469   : > { %v1799_v28 = vld [vmem:[%s2103_s18] sm:$0xff]  }
 0x46a   : > { %1734 = vmatmul.mubr.msk.bf16.vlgmr.msra.gmra.mrb[0].mxu0 %vm1174_vm12, %v1795_v17  ;;  %1440 = vxpose.xlu1.b32.start [1/2] (short) (narrow) %v1438_v37, 8  ;;  %v1627_v39 = vld [vmem:[%s2104_s19] ss:$0 sm:$0xff] }
 0x46b   : > { %v1225_v18 = vld [vmem:[#allocation3] sm:$0x1]  ;;  %1755 = vmatprep.mubr.msk.bf16.mxu0 %vm1826_vm11, %v1825_v15  ;;  %1752 = vmatpush3.bf16.msra.mxu0 %v1799_v28  ;;  %v1546_v1 = vld [vmem:[%s2105_s20] sm:$0x3] }
 0x46c   : > { %v1237_v20 = vsel %vm1235_vm13, %v1225_v18, 0  ;;  %1753 = vmatprep.subr.bf16.mxu0 %v1825_v15 }
 0x46d   : > { %1738 = vmatpush3.bf16.msra.mxu1 %v1237_v20 }
 0x46e   : > { %1743 = vmatprep.subr.bf16.mxu1 %v1825_v15  ;;  %1441 = vxpose.xlu1.b32.end [2/2] (short) (narrow) %v1439_v38, 8 }
 0x46f   : > { %1754 = vmatpush3.bf16.msra.mxu0 %v1800_v29 }
 0x470   : > { %1740 = vmatmul.mubr.msk.bf16.vlgmr.msra.gmra.mrb[0].mxu1 %vm1231_vm14, %v1223_v19  ;;  %1766 = vmatprep.subr.bf16.mxu0 %v1827_v52 }
 0x471   : > { %1744 = vmatpush3.bf16.msra.mxu1 %v1797_v21  ;;  %1747 = vmatprep.mubr.msk.bf16.mxu1 %vm1826_vm11, %v1825_v15 }
 0x472   : > { %1745 = vmatprep.subr.bf16.mxu1 %v1825_v15 }
 0x475   : > { %1746 = vmatpush3.bf16.msra.mxu1 %v1798_v22 }
 0x4ea   : > { %v1456_v0 = vpop.trf.xlu1 }
 0x53d   : > { %v1216_v23 = vpop.f32.mrb[0].mxu0 }
 0x53e   : > { %v1735_v24 = vpop.f32.mrb[1].mxu0 }
 0x53f   : > { %v1219_v25 = vpop.f32.mrb[2].mxu0 }
 0x540   : > { %v1280_v26 = vpack.c.bf16 %v1219_v25, %v1216_v23  ;;  %v1736_v27 = vpop.f32.mrb[3].mxu0 }
 0x542   : > { %1748 = vmatmul.mubr.msk.bf16.vlgmr.msra.gmra.mrb[0].mxu1 %vm1297_vm15, %v1280_v26 }
 0x615   : > { %v1335_v30 = vpop.f32.mrb[0].mxu1 }
 0x616   : > { %v1749_v31 = vpop.f32.mrb[1].mxu1  ;;  %v1342_v33 = vmax.f32 %v1335_v30, 0.0 }
 0x617   : > { %v1338_v32 = vpop.f32.mrb[2].mxu1 }
 0x618   : > { %v1343_v34 = vmax.f32 %v1338_v32, 0.0  ;;  %v1750_v35 = vpop.f32.mrb[3].mxu1 }
 0x61a   : > { %v1344_v36 = vpack.c.bf16 %v1343_v34, %v1342_v33 }
 0x61c   : > { %1756 = vmatmul.mubr.msk.bf16.vlgmr.msra.gmra.mrb[4].mxu0 %vm1297_vm15, %v1344_v36 }
 0x61d   : > { %1763 = vmatprep.mubr.msk.f32.mxu0 %vm1826_vm11, %v1825_v15 }
 0x6ef   : > { %v1405_v40 = vpop.f32.mrb[4].mxu0 }
 0x6f0   : > { %v1406_v41 = vadd.f32 %v1627_v39, %v1405_v40  ;;  %v1757_v42 = vpop.f32.mrb[5].mxu0 }
 0x6f1   : > { %v1408_v43 = vpop.f32.mrb[6].mxu0 }
 0x6f2   : > { %v1631_v44 = vmul.f32 -1.442695, %v1406_v41  ;;  %v1409_v45 = vadd.f32 %v1627_v39, %v1408_v43  ;;  %v1758_v46 = vpop.f32.mrb[7].mxu0 }
 0x6f4   : > { %1802 = vpow2.f32 %v1631_v44  ;;  %v1632_v47 = vmul.f32 -1.442695, %v1409_v45 }
 0x6f6   : > { %1804 = vpow2.f32 %v1632_v47 }
 0x6fe   : > { %v1803_v48 = vpop.eup %1802 }
 0x6ff   : > { %v1420_v49 = vadd.f32 1.0, %v1803_v48 }
 0x700   : > { %v1805_v50 = vpop.eup %1804 }
 0x701   : > { %v1421_v51 = vadd.f32 1.0, %v1805_v50  ;;  %1806 = vrcp.f32 %v1420_v49 }
 0x703   : > { %1808 = vrcp.f32 %v1421_v51 }
 0x704   : > { %1810 = vtanh.f32 %v1406_v41 }
 0x705   : > { %1812 = vtanh.f32 %v1409_v45 }
 0x70b   : > { %v1807_v53 = vpop.eup %1806 }
 0x70c   : > { %v1426_v54 = vmul.f32 2.0, %v1807_v53 }
 0x70d   : > { %v1809_v55 = vpop.eup %1808 }
 0x70e   : > { %1430 = vrot.lane.b32.xlu0 %v1426_v54, %s1828_s26  ;;  %v1427_v56 = vmul.f32 2.0, %v1809_v55  ;;  %v1811_v58 = vpop.eup %1810 }
 0x70f   : > { %v1813_v59 = vpop.eup %1812 }
 0x712   : > { %1432 = vrot.lane.b32.xlu0 %v1427_v56, %s1828_s26 }
 0x780   : > { %v1431_v57 = vpop.permute.xlu0 %1430 }
 0x781   : > { %v1436_v61 = vmul.f32 %v1811_v58, %v1431_v57 }
 0x784   : > { %v1433_v60 = vpop.permute.xlu0 %1432 }
 0x785   : > { %v1437_v62 = vmul.f32 %v1813_v59, %v1433_v60 }
 0x787   : > { %v1767_v63 = vpack.c.bf16 %v1437_v62, %v1436_v61 }
 0x789   : > { %1768 = vmatpush3.bf16.msra.mxu0 %v1767_v63 }
 0x78c   : > { %1764 = vmatmul.mubr.msk.f32.vlgmr.msra.gmra.mrb[8].mxu0 %vm1472_vm0, %v1456_v0 }
 0x85f   : > { %v1542_v3 = vpop.f32.mrb[8].mxu0 }
 0x860   : > { %v1547_v4 = vadd.f32 %v1546_v1, %v1542_v3  ;;  %v1765_v5 = vpop.f32.mrb[9].mxu0 }
 0x862   : > { %1549 = vst.msk [vmem:[%s2105_s20] sm:$0x3] %vm1548_vm1, %v1547_v4 }
 0x863 PF: > { %s32_s23 = sadd.s32 1, %s1820_s23  }
 0x864   : > { %p29_p5 = scmp.ge.s32.totalorder %s32_s23, 4  }
 0x866   :  { %31 = sbr.rel (!%p29_p5) target bundleno = 6 (0x6), region = 133 }

</bundles_post_ra>
